<compile_context>
chip_gen: v7x
topology: tpu7x:2x2x1
jax: 0.10.0
libtpu: 0.0.40
codegen_flags: <defaults>
</compile_context>

<pallas_src>
import jax
import jax.numpy as jnp
from jax.experimental import pallas as pl
from jax.experimental.pallas import tpu as pltpu

_LANE = 128        # TPU vreg lane width (last dim)
_SUBLANE = 8       # TPU vreg sublane width (second-to-last dim)
_NEG_BIG = -1e30   # bias for padded output columns (exp() underflows to exact 0)
_VMEM_BUDGET = 24 << 20  # conservative per-call VMEM cap (v7x-safe)


def _round_up(x, m):
    return ((x + m - 1) // m) * m


def _discriminator_kernel(x_ref, w_ref, b_ref, o_ref):
    # x_ref: (TB, In) bf16, w_ref: (In, 128) bf16  -> MXU matmul, f32 accumulate.
    # b_ref: (1, 128) f32 (pad columns = -1e30), added once in f32.
    logits = jnp.dot(
        x_ref[...], w_ref[...], preferred_element_type=jnp.float32
    ) + b_ref[...]

    # Numerically stable LogSoftmax over the last axis (== PyTorch dim=1), f32.
    # Pad columns contribute exp(-huge) == 0 to the sum and never win the max.
    m = jnp.max(logits, axis=-1, keepdims=True)
    shifted = logits - m
    lse = jnp.log(jnp.sum(jnp.exp(shifted), axis=-1, keepdims=True))

    # Store only the real output columns (dense (TB, Out) block, no padded slab).
    out_w = o_ref.shape[-1]
    o_ref[...] = (shifted[:, :out_w] - lse).astype(o_ref.dtype)


def init_discriminator_params(w_t, b, *, matmul_dtype=jnp.bfloat16):
    """One-time parameter prep (hoisted out of the forward path).

    w_t : (In, Out) weight (PyTorch nn.Linear weight, transposed).
    b   : (Out,)    bias.
    Returns (w_p, b_p): (In, 128*) matmul_dtype weight with zero pad columns and
    (1, 128*) f32 bias with -1e30 in the pad columns.
    """
    In, Out = w_t.shape
    out_p = _round_up(max(Out, _LANE), _LANE)
    w_p = (
        jnp.zeros((In, out_p), dtype=matmul_dtype)
        .at[:, :Out]
        .set(w_t.astype(matmul_dtype))
    )
    b_p = (
        jnp.full((1, out_p), _NEG_BIG, dtype=jnp.float32)
        .at[0, :Out]
        .set(b.astype(jnp.float32))
    )
    return w_p, b_p


def _pick_batch_tile(B, In, out_p, out_size, x_itemsize, w_itemsize, max_tb):
    tb = max(_SUBLANE, min(max_tb, _round_up(B, _SUBLANE)))
    resident = In * out_p * w_itemsize + out_p * 4  # VMEM-resident weight + bias

    def vmem_usage(t):
        # double-buffered x tile + double-buffered (t, out_size) f32 output tile
        return 2 * (t * In * x_itemsize + t * out_size * 4) + resident

    while tb > _SUBLANE and vmem_usage(tb) > _VMEM_BUDGET:
        tb = max(_SUBLANE, _round_up(tb // 2, _SUBLANE))
    return tb


def discriminator_forward(h_t, w_p, b_p, out_size, *, max_tb=4096):
    """Forward pass of Discriminator.

    h_t      : (B, In) activations (any float dtype; cast to the weight dtype
               for the MXU -- in practice this cast fuses into h_t's producer).
    w_p, b_p : padded params from init_discriminator_params.
    out_size : real number of classes (Out).
    Returns (B, out_size) f32 log-probabilities (LogSoftmax over dim=1).
    """
    B, In = h_t.shape
    out_p = w_p.shape[1]

    x = h_t.astype(w_p.dtype)  # bf16 MXU input (halves HBM read traffic)

    TB = _pick_batch_tile(
        B, In, out_p, out_size, x.dtype.itemsize, w_p.dtype.itemsize, max_tb
    )
    grid = (pl.cdiv(B, TB),)  # ragged last block handled by Pallas masking

    out = pl.pallas_call(
        _discriminator_kernel,
        out_shape=jax.ShapeDtypeStruct((B, out_size), jnp.float32),
        grid_spec=pltpu.PrefetchScalarGridSpec(
            num_scalar_prefetch=0,
            grid=grid,
            in_specs=[
                # Per-step batch tile of activations (double-buffered).
                pl.BlockSpec((TB, In), lambda i: (i, 0)),
                # Weight + bias: same block every step -> VMEM-resident.
                pl.BlockSpec((In, out_p), lambda i: (0, 0)),
                pl.BlockSpec((1, out_p), lambda i: (0, 0)),
            ],
            # Dense (TB, Out) output block: no padded-output writeback, no slice.
            out_specs=pl.BlockSpec((TB, out_size), lambda i: (i, 0)),
        ),
        compiler_params=pltpu.CompilerParams(
            # Batch tiles are independent -> shard across TCs on v7x.
            dimension_semantics=("parallel",),
        ),
    )(x, w_p, b_p)

    return out


if __name__ == "__main__":
    # Small, module-consistent shapes: batch=8, input_size=32, output_size=16.
    B, INPUT_SIZE, OUTPUT_SIZE = 8, 32, 16

    key = jax.random.PRNGKey(0)
    k_x, k_w, k_b = jax.random.split(key, 3)

    h_t = jax.random.normal(k_x, (B, INPUT_SIZE), dtype=jnp.float32)

    # Deterministic param init (nn.Linear-style uniform bound = 1/sqrt(fan_in)).
    bound = 1.0 / (INPUT_SIZE ** 0.5)
    # PyTorch weight is (Out, In); store transposed (In, Out) for the kernel.
    w_torch = jax.random.uniform(
        k_w, (OUTPUT_SIZE, INPUT_SIZE), minval=-bound, maxval=bound,
        dtype=jnp.float32,
    )
    w_t = w_torch.T
    b = jax.random.uniform(
        k_b, (OUTPUT_SIZE,), minval=-bound, maxval=bound, dtype=jnp.float32
    )

    # One-time padded-parameter prep (hoisted out of the per-call path).
    w_p, b_p = init_discriminator_params(w_t, b)

    out = discriminator_forward(h_t, w_p, b_p, OUTPUT_SIZE)
    out = jax.block_until_ready(out)
    assert out.shape == (B, OUTPUT_SIZE)
    assert bool(jnp.all(jnp.isfinite(out)))

    # Reference 1: same bf16 matmul inputs, f32 accumulate (tight tolerance).
    h_bf = h_t.astype(jnp.bfloat16).astype(jnp.float32)
    w_bf = w_t.astype(jnp.bfloat16).astype(jnp.float32)
    logits_bf = (
        jnp.dot(h_bf, w_bf, precision=jax.lax.Precision.HIGHEST) + b[None, :]
    )
    ref_bf = jax.nn.log_softmax(logits_bf, axis=1)
    assert jnp.allclose(out, ref_bf, atol=1e-4, rtol=1e-4)

    # Reference 2: full-f32 PyTorch-equivalent math (loose tolerance, bf16 inputs).
    ref_f32 = jax.nn.log_softmax(h_t @ w_t + b[None, :], axis=1)
    assert jnp.allclose(out, ref_f32, atol=5e-2, rtol=5e-2)

    print("KERNEL_OK")
</pallas_src>

<mosaic_0001>
module attributes {stable_mosaic.version = 11 : i64} {
  func.func @_discriminator_kernel(%arg0: i32, %arg1: memref<8x32xbf16, #tpu.memory_space<vmem>>, %arg2: memref<32x128xbf16, #tpu.memory_space<vmem>>, %arg3: memref<1x128xf32, #tpu.memory_space<vmem>>, %arg4: memref<8x16xf32, #tpu.memory_space<vmem>>) attributes {dimension_semantics = [#tpu.dimension_semantics<parallel>], iteration_bounds = array<i64: 1>, scalar_prefetch = 0 : i64, scratch_operands = 0 : i64, tpu.core_type = #tpu.core_type<tc>, window_params = [{transform_indices = @transform_0, window_bounds = array<i64: 8, 32>}, {pipeline_mode = #tpu.pipeline_mode<synchronous>, transform_indices = @transform_1, window_bounds = array<i64: 32, 128>}, {pipeline_mode = #tpu.pipeline_mode<synchronous>, transform_indices = @transform_2, window_bounds = array<i64: 1, 128>}, {transform_indices = @transform_3, window_bounds = array<i64: 8, 16>}]} {
    %c0 = arith.constant 0 : index
    %c0_0 = arith.constant 0 : index
    %0 = vector.load %arg1[%c0, %c0_0] : memref<8x32xbf16, #tpu.memory_space<vmem>>, vector<8x32xbf16>
    %c0_1 = arith.constant 0 : index
    %c0_2 = arith.constant 0 : index
    %1 = vector.load %arg2[%c0_1, %c0_2] : memref<32x128xbf16, #tpu.memory_space<vmem>>, vector<32x128xbf16>
    %cst = arith.constant dense<0.000000e+00> : vector<8x128xf32>
    %2 = tpu.matmul %0, %1, %cst {dimension_numbers = #tpu.dot_dimension_numbers<[1], [0], [0], [1], [0, 0, 1, 1], [], []>} : vector<8x32xbf16>, vector<32x128xbf16>, vector<8x128xf32> -> vector<8x128xf32>
    %c0_3 = arith.constant 0 : index
    %c0_4 = arith.constant 0 : index
    %3 = vector.load %arg3[%c0_3, %c0_4] : memref<1x128xf32, #tpu.memory_space<vmem>>, vector<1x128xf32>
    %4 = vector.broadcast %3 : vector<1x128xf32> to vector<8x128xf32>
    %5 = arith.addf %2, %4 : vector<8x128xf32>
    %cst_5 = arith.constant dense<0xFF800000> : vector<8xf32>
    %6 = vector.multi_reduction <maximumf>, %5, %cst_5 [1] : vector<8x128xf32> to vector<8xf32>
    %7 = vector.shape_cast %6 : vector<8xf32> to vector<8x1xf32>
    %8 = vector.broadcast %7 : vector<8x1xf32> to vector<8x128xf32>
    %9 = arith.subf %5, %8 : vector<8x128xf32>
    %10 = math.exp %9 : vector<8x128xf32>
    %cst_6 = arith.constant dense<0.000000e+00> : vector<8xf32>
    %11 = vector.multi_reduction <add>, %10, %cst_6 [1] : vector<8x128xf32> to vector<8xf32>
    %12 = vector.shape_cast %11 : vector<8xf32> to vector<8x1xf32>
    %13 = math.log %12 : vector<8x1xf32>
    %14 = vector.extract_strided_slice %9 {offsets = [0, 0], sizes = [8, 16], strides = [1, 1]} : vector<8x128xf32> to vector<8x16xf32>
    %15 = vector.broadcast %13 : vector<8x1xf32> to vector<8x16xf32>
    %16 = arith.subf %14, %15 : vector<8x16xf32>
    %c0_7 = arith.constant 0 : index
    %c0_8 = arith.constant 0 : index
    %17 = vector.load %arg4[%c0_7, %c0_8] : memref<8x16xf32, #tpu.memory_space<vmem>>, vector<8x16xf32>
    tpu.vector_store %arg4[%c0_7, %c0_8], %16 {strides = array<i32>} : memref<8x16xf32, #tpu.memory_space<vmem>>, vector<8x16xf32>,
    return
  }
  func.func @transform_0(%arg0: i32) -> (i32, i32) {
    %c0_i32 = arith.constant 0 : i32
    %c0_i32_0 = arith.constant 0 : i32
    return %arg0, %c0_i32 : i32, i32
  }
  func.func @transform_1(%arg0: i32) -> (i32, i32) {
    %c0_i32 = arith.constant 0 : i32
    %c0_i32_0 = arith.constant 0 : i32
    %c0_i32_1 = arith.constant 0 : i32
    return %c0_i32, %c0_i32_0 : i32, i32
  }
  func.func @transform_2(%arg0: i32) -> (i32, i32) {
    %c0_i32 = arith.constant 0 : i32
    %c0_i32_0 = arith.constant 0 : i32
    %c0_i32_1 = arith.constant 0 : i32
    return %c0_i32, %c0_i32_0 : i32, i32
  }
  func.func @transform_3(%arg0: i32) -> (i32, i32) {
    %c0_i32 = arith.constant 0 : i32
    %c0_i32_0 = arith.constant 0 : i32
    return %arg0, %c0_i32 : i32, i32
  }
}

</mosaic_0001>

<bundles_post_ra>
// kernel: tpu_custom_call.1
= control target key start
LH: loop header
LB: loop body
LE: loop exit
PB: predicated region body
PF: predicated region fallthrough
CT: control target
= control target key end

     0   :  { %8 = vsyncpa [#allocation3], 0  ;;  %s311_s0 = inlined_call_operand.hbm [shape: bf16[8,32], index: 0, kind: input, shape index: {}]   ;;  %s312_s1 = inlined_call_operand.hbm [shape: bf16[32,128], index: 1, kind: input, shape index: {}]   ;;  %s313_s2 = inlined_call_operand.vmem [shape: f32[1,128], index: 2, kind: input, shape index: {}]   ;;  %s314_s3 = inlined_call_operand.hbm [shape: f32[8,16], index: 3, kind: output, shape index: {}]  }
   0x1   :  { %9 = vsyncpa [#allocation6], 0 }
   0x2   :  { %10 = vsyncpa [#allocation4], 0  ;;  %s238_s12 = smov [#allocation2]   ;;  %s239_s14 = smov [#allocation5]  }
   0x3   :  { %s17_s13 = sshll.u32 %s238_s12, 4  ;;  %s26_s15 = sshll.u32 %s239_s14, 4  ;;  %s18_s13 = int_to_ptr.vmem [resolvable:$true] %s17_s13  ;;  %s265_s15 = int_to_ptr.vmem [resolvable:$true] %s26_s15 }
   0x4   :  { %s166_s18 = scalar_lea.hbm %s311_s0, 64 }
   0x5   :  { %p167_p0 = scmp.ne.s32.totalorder %s311_s0, %s166_s18  ;;  %p170_p1 = scmp.lt.u32.totalorder %s166_s18, %s311_s0 }
   0x7   :  { %p172_p2 = pnand %p170_p1, %p167_p0 }
   0x9   :  { %175 = shalt.err (!%p172_p2)
}
   0xa   :  { %s176_s23 = scalar_lea.vmem %s18_s13, 64  ;;  %p181_p4 = scmp.lt.s32.totalorder %s18_s13, %s18_s13 }
   0xb   :  { %p177_p3 = scmp.ne.s32.totalorder %s18_s13, %s176_s23  ;;  %p182_p5 = scmp.lt.s32.totalorder %s176_s23, %s176_s23 }
   0xd   :  { %p183_p6 = por %p182_p5, %p181_p4 }
   0xf   :  { %p184_p7 = pnand %p183_p6, %p177_p3 }
  0x11   :  { %187 = shalt.err (!%p184_p7)
}
  0x12   :  { %20 = dma.hbm_to_vmem [thread:$0]  %s311_s0, 64, %s18_s13, [#allocation3]  }
  0x13   :  { %s188_s28 = scalar_lea.hbm %s312_s1, 256 }
  0x14   :  { %p189_p8 = scmp.ne.s32.totalorder %s312_s1, %s188_s28  ;;  %p192_p9 = scmp.lt.u32.totalorder %s188_s28, %s312_s1 }
  0x16   :  { %p194_p10 = pnand %p192_p9, %p189_p8 }
  0x18   :  { %197 = shalt.err (!%p194_p10)
}
  0x19   :  { %s198_s6 = scalar_lea.vmem %s265_s15, 256  ;;  %p203_p12 = scmp.lt.s32.totalorder %s265_s15, %s265_s15 }
  0x1a   :  { %p199_p11 = scmp.ne.s32.totalorder %s265_s15, %s198_s6  ;;  %p204_p13 = scmp.lt.s32.totalorder %s198_s6, %s198_s6 }
  0x1c   :  { %p205_p0 = por %p204_p13, %p203_p12 }
  0x1e   :  { %p206_p1 = pnand %p205_p0, %p199_p11 }
  0x20   :  { %209 = shalt.err (!%p206_p1)
}
  0x21   :  { %s240_s0 = smov 64   ;;  %s241_s7 = smov 4  }
  0x22   :  { %32 = dma.hbm_to_vmem [thread:$0]  %s312_s1, 256, %s265_s15, [#allocation6], %s240_s0, %s240_s0, %s241_s7  }
  0x23   :  { %232 = dma.done.wait [#allocation3], 64  }
  0x24   :  { %233 = vsyncadd [#allocation3], 4294967232 }
  0x25   :  { %234 = dma.done.wait [#allocation6], 256  }
  0x26   :  { %235 = vsyncadd [#allocation6], 4294967040  ;;  %v242_v0 = vmov 0.0   ;;  %vm243_vm0 = vmmov 0   ;;  %v160_v1 = vld [vmem:[#allocation5] sm:$0xff]   ;;  %v161_v2 = vld [vmem:[#allocation5 + $0x8] sm:$0xff]  }
  0x27   :  { %145 = vmatprep.subr.bf16.mxu0 %v242_v0  ;;  %149 = vmatprep.mubr.msk.bf16.mxu0 %vm243_vm0, %v242_v0  ;;  %v42_v3 = vld [vmem:[#allocation2] sm:$0xf]  ;;  %vm66_vm1 = vcmask 261120   ;;  %s244_s1 = smov [#allocation7]   ;;  %vm120_vm2 = vcmask 130048  }
  0x28   :  { %146 = vmatpush3.bf16.msra.mxu0 %v160_v1  ;;  %v138_v4 = vld [vmem:[%s313_s2] ss:$0 sm:$0xff]  ;;  %s128_s12 = sshll.u32 %s244_s1, 4  ;;  %s129_s12 = int_to_ptr.vmem [resolvable:$true] %s128_s12 }
  0x29   :  { %147 = vmatprep.subr.bf16.mxu0 %v242_v0  ;;  %s210_s2 = scalar_lea.vmem %s129_s12, 128  ;;  %p215_p3 = scmp.lt.s32.totalorder %s129_s12, %s129_s12 }
  0x2a   :  { %p211_p2 = scmp.ne.s32.totalorder %s129_s12, %s210_s2  ;;  %p216_p4 = scmp.lt.s32.totalorder %s210_s2, %s210_s2 }
  0x2c   :  { %148 = vmatpush3.bf16.msra.mxu0 %v161_v2  ;;  %p217_p5 = por %p216_p4, %p215_p3 }
  0x2e   :  { %p218_p6 = pnand %p217_p5, %p211_p2 }
  0x2f   :  { %150 = vmatmul.mubr.msk.bf16.vlgmr.msra.gmra.mrb[0].mxu0 %vm66_vm1, %v42_v3 }
 0x102   :  { %v104_v5 = vpop.f32.mrb[0].mxu0 }
 0x103   :  { %v105_v6 = vadd.f32 %v138_v4, %v104_v5  ;;  %v151_v7 = vpop.f32.mrb[1].mxu0 }
 0x104   :  { %v107_v8 = vpop.f32.mrb[2].mxu0 }
 0x105   :  { %110 = vmax.xlane.f32.xlu0 %v105_v6  ;;  %v152_v9 = vpop.f32.mrb[3].mxu0 }
 0x192   :  { %v111_v10 = vpop.xlane.xlu0 %110 }
 0x193   :  { %v112_v11 = vsub.f32 %v105_v6, %v111_v10 }
 0x195   :  { %v113_v12 = vmul.f32 1.442695, %v112_v11 }
 0x197   :  { %162 = vpow2.f32 %v113_v12 }
 0x1a1   :  { %v163_v13 = vpop.eup %162 }
 0x1a2   :  { %115 = vadd.xlane.f32.xlu0 %v163_v13 }
 0x22f   :  { %v116_v14 = vpop.xlane.xlu0 %115 }
 0x230   :  { %164 = vlog2.f32 %v116_v14 }
 0x23a   :  { %v165_v15 = vpop.eup %164 }
 0x23b   :  { %v118_v16 = vmul.f32 0.6931472, %v165_v15 }
 0x23d   :  { %v119_v17 = vsub.f32 %v112_v11, %v118_v16 }
 0x23f   :  { %121 = vst.msk [vmem:[#allocation7] sm:$0xff] %vm120_vm2, %v119_v17 }
 0x240   :  { %221 = shalt.err (!%p218_p6)
}
 0x241   :  { %s222_s15 = scalar_lea.hbm %s314_s3, 128 }
 0x242   :  { %p223_p7 = scmp.ne.s32.totalorder %s314_s3, %s222_s15  ;;  %p226_p8 = scmp.lt.u32.totalorder %s222_s15, %s314_s3 }
 0x244   :  { %p228_p9 = pnand %p226_p8, %p223_p7 }
 0x246   :  { %231 = shalt.err (!%p228_p9)
}
 0x247   :  { %131 = dma.vmem_to_hbm [thread:$0]  %s129_s12, 128, %s314_s3, [#allocation4]  }
 0x248   :  { %236 = dma.done.wait [#allocation4], 128  }
 0x249   :  { %237 = vsyncadd [#allocation4], 4294967168 }
 0x24a   :  { %135 = vsyncpa [#allocation3], 1 }
 0x24b   :  { %136 = vsyncpa [#allocation6], 1 }
 0x24c   :  { %137 = vsyncpa [#allocation4], 1 }

</bundles_post_ra>
